<compile_context>
chip_gen: v5e
topology: v5e:2x2
jax: 0.10.0
libtpu: 0.0.40
codegen_flags: <defaults>
</compile_context>

<pallas_src>
import functools

import jax
import jax.numpy as jnp
import numpy as np
from jax.experimental import pallas as pl
from jax.experimental.pallas import tpu as pltpu


def _round_up(x: int, m: int) -> int:
    return (x + m - 1) // m * m


def _mfc_kernel_dropout(x_ref, w_ref, b_ref, bits_ref, o_ref, *, dropout_p: float):
    # (tm, K) @ (K, tn) -> f32 accumulate on the MXU.
    h = jnp.dot(x_ref[...], w_ref[...], preferred_element_type=jnp.float32)
    h = h + b_ref[...]
    h = jnp.maximum(h, 0.0)
    # Inverted dropout, integer threshold: keep iff bits >= round(p * 2^32).
    thr = np.uint32(min(int(round(dropout_p * (1 << 32))), (1 << 32) - 1))
    keep = bits_ref[...] >= thr
    scale = np.float32(1.0 / (1.0 - dropout_p))
    h = jnp.where(keep, h * scale, jnp.float32(0.0))
    o_ref[...] = h.astype(o_ref.dtype)


def _mfc_kernel_nodrop(x_ref, w_ref, b_ref, o_ref):
    h = jnp.dot(x_ref[...], w_ref[...], preferred_element_type=jnp.float32)
    h = h + b_ref[...]
    h = jnp.maximum(h, 0.0)
    o_ref[...] = h.astype(o_ref.dtype)


def mfc_forward(x, w, b, key, dropout_p: float, *,
                tm: int = 256, tn: int = 256,
                compute_dtype=jnp.bfloat16):
    """Forward of MFC: dropout(relu(x @ W + b)).

    x: (B, D_in) f32, w: (D_in, D_out) f32 (transposed vs PyTorch),
    b: (D_out,) f32, key: jax PRNG key for dropout, dropout_p in [0, 1).
    """
    assert 0.0 <= dropout_p < 1.0
    B, K = x.shape
    K2, N = w.shape
    assert K == K2
    out_dtype = x.dtype

    # Tile sizes: sublane-aligned tm, lane-dense tn (multiple of 128).
    tm_eff = _round_up(min(tm, _round_up(B, 8)), 8)
    tn_eff = _round_up(min(tn, _round_up(N, 128)), 128)
    B_pad = _round_up(B, tm_eff)
    N_pad = _round_up(N, tn_eff)

    # Cast matmul operands to the MXU compute dtype in the wrapper (halves
    # weight DMA bytes); keep bias / epilogue in f32.
    xc = x.astype(compute_dtype)
    wc = w.astype(compute_dtype)
    if B_pad != B:
        xc = jnp.pad(xc, ((0, B_pad - B), (0, 0)))
    if N_pad != N:
        wc = jnp.pad(wc, ((0, 0), (0, N_pad - N)))
        b = jnp.pad(b, (0, N_pad - N))
    b2 = b.astype(jnp.float32).reshape(1, N_pad)

    grid = (B_pad // tm_eff, N_pad // tn_eff)

    in_specs = [
        pl.BlockSpec((tm_eff, K), lambda i, j: (i, 0)),     # x tile
        pl.BlockSpec((K, tn_eff), lambda i, j: (0, j)),     # w tile
        pl.BlockSpec((1, tn_eff), lambda i, j: (0, j)),     # bias tile
    ]
    operands = [xc, wc, b2]

    if dropout_p > 0.0:
        bits = jax.random.bits(key, (B_pad, N_pad), dtype=jnp.uint32)
        in_specs.append(pl.BlockSpec((tm_eff, tn_eff), lambda i, j: (i, j)))
        operands.append(bits)
        kernel = functools.partial(_mfc_kernel_dropout, dropout_p=dropout_p)
    else:
        kernel = _mfc_kernel_nodrop

    # VMEM budget (BlockSpec double-buffers every operand); cap at v7x's
    # 64 MiB physical VMEM, floor at a few MiB.
    itemsize_c = jnp.dtype(compute_dtype).itemsize
    per_step = (tm_eff * K * itemsize_c
                + K * tn_eff * itemsize_c
                + tn_eff * 4
                + (tm_eff * tn_eff * 4 if dropout_p > 0.0 else 0)
                + tm_eff * tn_eff * jnp.dtype(out_dtype).itemsize)
    vmem_limit = int(min(64 * 1024 * 1024, max(4 * 1024 * 1024, 4 * per_step)))

    out = pl.pallas_call(
        kernel,
        out_shape=jax.ShapeDtypeStruct((B_pad, N_pad), out_dtype),
        grid=grid,
        in_specs=in_specs,
        out_specs=pl.BlockSpec((tm_eff, tn_eff), lambda i, j: (i, j)),
        compiler_params=pltpu.CompilerParams(
            dimension_semantics=("parallel", "parallel"),
            vmem_limit_bytes=vmem_limit),
    )(*operands)

    return out[:B, :N]


def init_mfc_params(key, fc_layers):
    """Xavier-uniform weight (matches xavier_init_fc), zero bias."""
    d_in, d_out = fc_layers
    r = np.sqrt(6.0) / np.sqrt(d_in + d_out)
    # PyTorch weight is (out, in); we store its transpose (in, out).
    w = jax.random.uniform(key, (d_in, d_out), jnp.float32, minval=-r, maxval=r)
    b = jnp.zeros((d_out,), jnp.float32)
    return w, b


if __name__ == "__main__":
    fc_layers = [32, 64]
    dropout_p = 0.1
    batch = 8

    key = jax.random.PRNGKey(0)
    kx, kw, kd = jax.random.split(key, 3)

    x = jax.random.normal(kx, (batch, fc_layers[0]), jnp.float32)
    w, b = init_mfc_params(kw, fc_layers)

    # Eval-style pass (dropout_p=0) checked against a pure-JAX reference.
    out_eval = jax.block_until_ready(mfc_forward(x, w, b, kd, 0.0))
    ref = jnp.maximum(x @ w + b, 0.0)
    assert out_eval.shape == (batch, fc_layers[1])
    np.testing.assert_allclose(np.asarray(out_eval), np.asarray(ref),
                               atol=5e-2, rtol=5e-2)  # bf16 MXU tolerance

    # Training-style pass with dropout.
    out = jax.block_until_ready(mfc_forward(x, w, b, kd, dropout_p))
    assert out.shape == (batch, fc_layers[1])
    assert bool(jnp.all(jnp.isfinite(out)))
    assert bool(jnp.all(out >= 0.0))  # post-ReLU; dropout only zeros

    print("KERNEL_OK")
</pallas_src>

<mosaic_0001>
module attributes {stable_mosaic.version = 11 : i64} {
  func.func @_mfc_kernel_nodrop(%arg0: i32, %arg1: i32, %arg2: memref<8x32xbf16, #tpu.memory_space<vmem>>, %arg3: memref<32x128xbf16, #tpu.memory_space<vmem>>, %arg4: memref<1x128xf32, #tpu.memory_space<vmem>>, %arg5: memref<8x128xf32, #tpu.memory_space<vmem>>) attributes {dimension_semantics = [#tpu.dimension_semantics<parallel>, #tpu.dimension_semantics<parallel>], iteration_bounds = array<i64: 1, 1>, scalar_prefetch = 0 : i64, scratch_operands = 0 : i64, tpu.core_type = #tpu.core_type<tc>, window_params = [{transform_indices = @transform_0, window_bounds = array<i64: 8, 32>}, {transform_indices = @transform_1, window_bounds = array<i64: 32, 128>}, {transform_indices = @transform_2, window_bounds = array<i64: 1, 128>}, {transform_indices = @transform_3, window_bounds = array<i64: 8, 128>}]} {
    %c0 = arith.constant 0 : index
    %c0_0 = arith.constant 0 : index
    %0 = vector.load %arg2[%c0, %c0_0] : memref<8x32xbf16, #tpu.memory_space<vmem>>, vector<8x32xbf16>
    %c0_1 = arith.constant 0 : index
    %c0_2 = arith.constant 0 : index
    %1 = vector.load %arg3[%c0_1, %c0_2] : memref<32x128xbf16, #tpu.memory_space<vmem>>, vector<32x128xbf16>
    %cst = arith.constant dense<0.000000e+00> : vector<8x128xf32>
    %2 = tpu.matmul %0, %1, %cst {dimension_numbers = #tpu.dot_dimension_numbers<[1], [0], [0], [1], [0, 0, 1, 1], [], []>} : vector<8x32xbf16>, vector<32x128xbf16>, vector<8x128xf32> -> vector<8x128xf32>
    %c0_3 = arith.constant 0 : index
    %c0_4 = arith.constant 0 : index
    %3 = vector.load %arg4[%c0_3, %c0_4] : memref<1x128xf32, #tpu.memory_space<vmem>>, vector<1x128xf32>
    %4 = vector.broadcast %3 : vector<1x128xf32> to vector<8x128xf32>
    %5 = arith.addf %2, %4 : vector<8x128xf32>
    %cst_5 = arith.constant 0.000000e+00 : f32
    %6 = vector.broadcast %cst_5 : f32 to vector<8x128xf32>
    %7 = arith.maximumf %5, %6 : vector<8x128xf32>
    %c0_6 = arith.constant 0 : index
    %c0_7 = arith.constant 0 : index
    %8 = vector.load %arg5[%c0_6, %c0_7] : memref<8x128xf32, #tpu.memory_space<vmem>>, vector<8x128xf32>
    tpu.vector_store %arg5[%c0_6, %c0_7], %7 {strides = array<i32>} : memref<8x128xf32, #tpu.memory_space<vmem>>, vector<8x128xf32>,
    return
  }
  func.func @transform_0(%arg0: i32, %arg1: i32) -> (i32, i32) {
    %c0_i32 = arith.constant 0 : i32
    %c0_i32_0 = arith.constant 0 : i32
    return %arg0, %c0_i32 : i32, i32
  }
  func.func @transform_1(%arg0: i32, %arg1: i32) -> (i32, i32) {
    %c0_i32 = arith.constant 0 : i32
    %c0_i32_0 = arith.constant 0 : i32
    return %c0_i32, %arg1 : i32, i32
  }
  func.func @transform_2(%arg0: i32, %arg1: i32) -> (i32, i32) {
    %c0_i32 = arith.constant 0 : i32
    %c0_i32_0 = arith.constant 0 : i32
    return %c0_i32, %arg1 : i32, i32
  }
  func.func @transform_3(%arg0: i32, %arg1: i32) -> (i32, i32) {
    %c0_i32 = arith.constant 0 : i32
    return %arg0, %arg1 : i32, i32
  }
}

</mosaic_0001>

<bundles_post_ra>
// kernel: tpu_custom_call.1
= control target key start
LH: loop header
LB: loop body
LE: loop exit
PB: predicated region body
PF: predicated region fallthrough
CT: control target
= control target key end

     0   :  { %8 = vsyncpa [#allocation3], 0  ;;  %s236_s0 = inlined_call_operand.hbm [shape: bf16[8,32], index: 0, kind: input, shape index: {}]   ;;  %s237_s1 = inlined_call_operand.hbm [shape: bf16[32,128], index: 1, kind: input, shape index: {}]   ;;  %s238_s2 = inlined_call_operand.vmem [shape: f32[1,128], index: 2, kind: input, shape index: {}]   ;;  %s239_s3 = inlined_call_operand.hbm [shape: f32[8,128], index: 3, kind: output, shape index: {}]  }
   0x1   :  { %9 = vsyncpa [#allocation6], 0 }
   0x2   :  { %10 = vsyncpa [#allocation4], 0  ;;  %s16_s14 = sshll.u32 %s236_s0, 4  ;;  %s199_s15 = smov [#allocation2]   ;;  %s17_s14 = int_to_ptr.hbm [resolvable:$true] %s16_s14 }
   0x3   :  { %s18_s16 = sshll.u32 %s199_s15, 4  ;;  %s26_s19 = sshll.u32 %s237_s1, 4  ;;  %s19_s16 = int_to_ptr.vmem [resolvable:$true] %s18_s16  ;;  %s27_s19 = int_to_ptr.hbm [resolvable:$true] %s26_s19 }
   0x4   :  { %21 = dma.hbm_to_vmem [thread:$0]  %s17_s14, 64, %s19_s16, [#allocation3]  }
   0x5   :  { %s200_s20 = smov [#allocation5]   ;;  %s201_s22 = smov 64  }
   0x6   :  { %s28_s21 = sshll.u32 %s200_s20, 4  ;;  %s202_s23 = smov 4   ;;  %s29_s21 = int_to_ptr.vmem [resolvable:$true] %s28_s21 }
   0x7   :  { %34 = dma.hbm_to_vmem [thread:$0]  %s27_s19, 256, %s29_s21, [#allocation6], %s201_s22, %s201_s22, %s202_s23  }
   0x8   :  { %193 = dma.done.wait [#allocation3], 64  }
   0x9   :  { %194 = vsyncadd [#allocation3], 4294967232 }
   0xa   :  { %195 = dma.done.wait [#allocation6], 256  }
   0xb   :  { %196 = vsyncadd [#allocation6], 4294967040  ;;  %v114_v0 = vld [vmem:[#allocation5 + $0x8] sm:$0xff]  ;;  %v113_v1 = vld [vmem:[#allocation5] sm:$0xff]  ;;  %vm67_vm0 = vcmask 261120   ;;  %s203_s24 = smov [#allocation7]  }
   0xc   :  { %77 = vmatpush.bf16.msra.mxu0 %v114_v0  ;;  %v46_v2 = vld [vmem:[#allocation2] sm:$0xf]  ;;  %s91_s25 = sshll.u32 %s203_s24, 4  ;;  %s93_s28 = sshll.u32 %s239_s3, 4  ;;  %s92_s25 = int_to_ptr.vmem [resolvable:$true] %s91_s25  ;;  %s94_s28 = int_to_ptr.hbm [resolvable:$true] %s93_s28 }
   0xd   :  { %v120_v3 = vld [vmem:[%s238_s2] ss:$0 sm:$0xff] }
  0x10   :  { %78 = vmatpush.bf16.msra.mxu0 %v113_v1 }
  0x13   :  { %112 = vmatmul.msk.bf16.vlgmr.msra.gmra.mxu0 %vm67_vm0, %v46_v2 }
  0x90   :  { %v80_v4 = vpop.f32.mrf.mxu0 }
  0x91   :  { %v81_v5 = vadd.f32 %v120_v3, %v80_v4 }
  0x93   :  { %v84_v6 = vmax.f32 %v81_v5, 0.0 }
  0x95   :  { %85 = vst [vmem:[#allocation7] sm:$0xff] %v84_v6 }
  0x96   :  { %96 = dma.vmem_to_hbm [thread:$0]  %s92_s25, 128, %s94_s28, [#allocation4]  }
  0x98   :  { %v82_v7 = vpop.f32.mrf.mxu0 }
  0x99   :  { %197 = dma.done.wait [#allocation4], 128  }
  0x9a   :  { %198 = vsyncadd [#allocation4], 4294967168 }
  0x9b   :  { %101 = vsyncpa [#allocation3], 1 }
  0x9c   :  { %102 = vsyncpa [#allocation6], 1 }
  0x9d   :  { %103 = vsyncpa [#allocation4], 1 }

</bundles_post_ra>
